<compile_context>
chip_gen: v6e
topology: v6e:2x2x1
jax: 0.10.0
libtpu: 0.0.40
codegen_flags: <defaults>
</compile_context>

<pallas_src>
import jax
import jax.numpy as jnp
from jax.experimental import pallas as pl
from jax.experimental.pallas import tpu as pltpu


def _wce_kernel(logits_ref, labels_ref, w_ref, out_ref,
                m_sc, l_sc, xy_sc, wy_sc):
    """Grid = (batch_blocks [parallel], class_blocks [arbitrary, last]).

    Streams the class axis with an online logsumexp.  Scratch (all (TB,1) f32):
      m_sc  running row max        l_sc  running row sum of exp
      xy_sc running picked logit   wy_sc running picked class weight
    """
    j = pl.program_id(1)

    @pl.when(j == 0)
    def _():
        m_sc[...] = jnp.full(m_sc.shape, -jnp.inf, jnp.float32)
        l_sc[...] = jnp.zeros(l_sc.shape, jnp.float32)
        xy_sc[...] = jnp.zeros(xy_sc.shape, jnp.float32)
        wy_sc[...] = jnp.zeros(wy_sc.shape, jnp.float32)

    # Native-dtype DMA, f32 compute (required on v5e; fine everywhere else).
    logits = logits_ref[...].astype(jnp.float32)            # (TB, TC)
    labels = labels_ref[...]                                 # (TB, 1) int32
    w = w_ref[...].astype(jnp.float32)                       # (1, TC)

    tc = logits.shape[1]
    cls_ids = j * tc + jax.lax.broadcasted_iota(jnp.int32, logits.shape, 1)
    hit = cls_ids == labels          # padded rows (label == -1) never match

    # Online (streaming) logsumexp over the class (lane) axis.
    m_new = jnp.maximum(m_sc[...], jnp.max(logits, axis=-1, keepdims=True))
    alpha = jnp.exp(m_sc[...] - m_new)
    l_sc[...] = alpha * l_sc[...] + jnp.sum(jnp.exp(logits - m_new),
                                            axis=-1, keepdims=True)
    m_sc[...] = m_new

    # Row-level picked logit / picked weight: each row's label lives in exactly
    # one class block, so the running sums end up holding x_i[y_i] and w[y_i].
    xy_sc[...] += jnp.sum(jnp.where(hit, logits, 0.0), axis=-1, keepdims=True)
    wy_sc[...] += jnp.sum(jnp.where(hit, w, 0.0), axis=-1, keepdims=True)

    @pl.when(j == pl.num_programs(1) - 1)
    def _():
        lse = m_sc[...] + jnp.log(l_sc[...])                 # (TB, 1)
        num_blk = jnp.sum(wy_sc[...] * (lse - xy_sc[...]))   # sum_i w[y_i]*(lse_i - x_i[y_i])
        den_blk = jnp.sum(wy_sc[...])                        # sum_i w[y_i]
        # Emit partials as a lane-dense (8, 128) tile: [0,0]=num, [0,1]=den.
        sub = jax.lax.broadcasted_iota(jnp.int32, (8, 128), 0)
        lane = jax.lax.broadcasted_iota(jnp.int32, (8, 128), 1)
        out_ref[0] = jnp.where(
            (sub == 0) & (lane == 0), num_blk,
            jnp.where((sub == 0) & (lane == 1), den_blk, 0.0)).astype(jnp.float32)


def _round_up(x, m):
    return ((x + m - 1) // m) * m


def _vmem_limits():
    """(per-step footprint budget, vmem_limit_bytes) by chip generation."""
    phys = 128 * 1024 * 1024
    try:
        info = pltpu.get_tpu_info()
        phys = int(getattr(info, "vmem_capacity_bytes", phys))
    except Exception:
        pass  # conservative fallback if the query is unavailable
    if phys <= 64 * 1024 * 1024:            # v7x: 64 MiB per TensorCore
        return 32 * 1024 * 1024, 48 * 1024 * 1024
    return 48 * 1024 * 1024, 96 * 1024 * 1024  # v5e/v6e: 128 MiB physical VMEM


def _pick_block_dims(batch, num_classes, itemsize, step_budget, block_classes=None):
    """Choose (block_rows, block_classes) against a per-step VMEM budget.

    Per-step footprint ~= 2*tb*tc*itemsize (double-buffered native-dtype logits)
    + ~4*tb*tc*4 bytes of f32 temporaries inside the kernel body (upcast, exp,
    iota/one-hot masks), plus negligible per-row scratch.
    """
    bp = _round_up(batch, 8)
    bytes_per_elem = 2 * itemsize + 4 * 4

    if block_classes is not None:
        tc = (num_classes if block_classes >= num_classes
              else _round_up(block_classes, 128))
    elif (step_budget // (bytes_per_elem * num_classes)) >= 8:
        tc = num_classes                     # whole class axis in one block
    else:
        # Class axis too wide for any useful batch tile: stream over classes
        # with lane-aligned (multiple-of-128) class blocks.
        tc = max(128, ((step_budget // (bytes_per_elem * 256)) // 128) * 128)
    if tc >= num_classes:
        tc = num_classes

    tb = (step_budget // (bytes_per_elem * tc)) // 8 * 8
    tb = max(8, min(tb, 8192, bp))
    # v7x has 2 TensorCores/chip: keep >= 2 batch blocks when the batch allows
    # so the 'parallel' grid axis can be sharded across cores.
    if tb >= bp and bp >= 16:
        tb = _round_up((bp + 1) // 2, 8)
    return tb, tc


def weighted_cross_entropy(y_pred, y_true, class_weights=None, *, block_classes=None):
    """F.cross_entropy(y_pred, y_true, weight=class_weights), mean reduction.

    y_pred: (B, C) float logits (any float dtype), y_true: (B,) int labels,
    class_weights: optional (C,) float.
    """
    B, C = y_pred.shape
    if class_weights is None:
        class_weights = jnp.ones((C,), jnp.float32)
    w2d = jnp.asarray(class_weights, jnp.float32).reshape(1, C)
    labels = jnp.asarray(y_true, jnp.int32).reshape(B, 1)

    step_budget, vmem_limit = _vmem_limits()
    itemsize = jnp.dtype(y_pred.dtype).itemsize
    tb, tc = _pick_block_dims(B, C, itemsize, step_budget, block_classes)

    # TODO(synk): for tiny class counts (C << 128, like C=4) lane-pack several
    # examples per 128-lane register wrapper-side; with the class axis minor,
    # only C of 128 lanes currently do useful work.

    logits = y_pred
    Cp = _round_up(C, tc)
    if Cp != C:
        # Padded class columns: most-negative logit (exp underflows to 0) and
        # zero weight; real labels never point at them.
        neg = float(jnp.finfo(logits.dtype).min)
        logits = jnp.pad(logits, ((0, 0), (0, Cp - C)), constant_values=neg)
        w2d = jnp.pad(w2d, ((0, 0), (0, Cp - C)))
    Bp = _round_up(B, tb)
    if Bp != B:
        # Padded rows carry label -1 -> zero one-hot -> zero contribution.
        logits = jnp.pad(logits, ((0, Bp - B), (0, 0)))
        labels = jnp.pad(labels, ((0, Bp - B), (0, 0)), constant_values=-1)

    nb, nc = Bp // tb, Cp // tc

    partials = pl.pallas_call(
        _wce_kernel,
        out_shape=jax.ShapeDtypeStruct((nb, 8, 128), jnp.float32),
        grid=(nb, nc),
        in_specs=[
            pl.BlockSpec((tb, tc), lambda i, j: (i, j)),   # logits, native dtype
            pl.BlockSpec((tb, 1), lambda i, j: (i, 0)),    # labels
            pl.BlockSpec((1, tc), lambda i, j: (0, j)),    # class weights
        ],
        out_specs=pl.BlockSpec((1, 8, 128), lambda i, j: (i, 0, 0)),
        scratch_shapes=[pltpu.VMEM((tb, 1), jnp.float32)] * 4,
        compiler_params=pltpu.CompilerParams(
            dimension_semantics=("parallel", "arbitrary"),
            vmem_limit_bytes=vmem_limit),
    )(logits, labels, w2d)

    num = jnp.sum(partials[:, 0, 0])
    den = jnp.sum(partials[:, 0, 1])
    # NOTE: den == 0 (all labels on zero-weight classes) yields NaN, matching
    # PyTorch's weighted-mean behaviour.
    return num / den


def _ref_loss(logits, labels, w):
    logits = logits.astype(jnp.float32)
    logp = jax.nn.log_softmax(logits, axis=-1)
    nll = -jnp.take_along_axis(logp, labels[:, None], axis=-1)[:, 0]
    sw = w[labels]
    return jnp.sum(sw * nll) / jnp.sum(sw)


if __name__ == "__main__":
    key = jax.random.PRNGKey(0)
    k1, k2, k3, k4, k5, k6 = jax.random.split(key, 6)

    # Check 1: module-scale shapes (batch=8, num_classes=4), f32.
    B, C = 8, 4
    y_pred = jax.random.normal(k1, (B, C), dtype=jnp.float32)
    y_true = jax.random.randint(k2, (B,), 0, C, dtype=jnp.int32)
    class_weights = jnp.array([1.0, 2.0, 0.5, 1.5], dtype=jnp.float32)

    loss = jax.jit(weighted_cross_entropy)(y_pred, y_true, class_weights)
    jax.block_until_ready(loss)
    ref = _ref_loss(y_pred, y_true, class_weights)
    assert jnp.allclose(loss, ref, atol=1e-5, rtol=1e-5), (loss, ref)

    # Check 2: bf16 logits + batch not a multiple of the block rows
    # (exercises batch padding and the native-dtype DMA / f32-compute path).
    B2 = 11
    y_pred2 = jax.random.normal(k3, (B2, C), jnp.float32).astype(jnp.bfloat16)
    y_true2 = jax.random.randint(k4, (B2,), 0, C, dtype=jnp.int32)
    loss2 = jax.jit(weighted_cross_entropy)(y_pred2, y_true2, class_weights)
    jax.block_until_ready(loss2)
    ref2 = _ref_loss(y_pred2, y_true2, class_weights)
    assert jnp.allclose(loss2, ref2, atol=1e-4, rtol=1e-4), (loss2, ref2)

    # Check 3: force the streaming (online-logsumexp) class path with class
    # padding: C=300 split into 128-wide class blocks.
    B3, C3 = 16, 300
    y_pred3 = jax.random.normal(k5, (B3, C3), dtype=jnp.float32)
    y_true3 = jax.random.randint(k6, (B3,), 0, C3, dtype=jnp.int32)
    w3 = jax.random.uniform(k1, (C3,), jnp.float32, 0.5, 2.0)
    loss3 = jax.jit(
        lambda a, b, c: weighted_cross_entropy(a, b, c, block_classes=128)
    )(y_pred3, y_true3, w3)
    jax.block_until_ready(loss3)
    ref3 = _ref_loss(y_pred3, y_true3, w3)
    assert jnp.allclose(loss3, ref3, atol=1e-5, rtol=1e-5), (loss3, ref3)

    print("KERNEL_OK")
</pallas_src>

<mosaic_0001>
module attributes {stable_mosaic.version = 11 : i64} {
  func.func @_wce_kernel(%arg0: i32, %arg1: i32, %arg2: memref<8x4xf32, #tpu.memory_space<vmem>>, %arg3: memref<8x1xi32, #tpu.memory_space<vmem>>, %arg4: memref<1x4xf32, #tpu.memory_space<vmem>>, %arg5: memref<1x8x128xf32, #tpu.memory_space<vmem>>, %arg6: memref<8x1xf32, #tpu.memory_space<vmem>>, %arg7: memref<8x1xf32, #tpu.memory_space<vmem>>, %arg8: memref<8x1xf32, #tpu.memory_space<vmem>>, %arg9: memref<8x1xf32, #tpu.memory_space<vmem>>) attributes {dimension_semantics = [#tpu.dimension_semantics<parallel>, #tpu.dimension_semantics<arbitrary>], iteration_bounds = array<i64: 1, 1>, scalar_prefetch = 0 : i64, scratch_operands = 4 : i64, tpu.core_type = #tpu.core_type<tc>, window_params = [{transform_indices = @transform_0, window_bounds = array<i64: 8, 4>}, {transform_indices = @transform_1, window_bounds = array<i64: 8, 1>}, {transform_indices = @transform_2, window_bounds = array<i64: 1, 4>}, {transform_indices = @transform_3, window_bounds = array<i64: 1, 8, 128>}]} {
    %c0_i32 = arith.constant 0 : i32
    %0 = arith.cmpi eq, %arg1, %c0_i32 : i32
    %1 = arith.extui %0 : i1 to i32
    %c0_i32_0 = arith.constant 0 : i32
    %2 = arith.cmpi ne, %1, %c0_i32_0 : i32
    scf.if %2 {
      %cst_31 = arith.constant 0xFF800000 : f32
      %48 = vector.broadcast %cst_31 : f32 to vector<8x1xf32>
      %c0_32 = arith.constant 0 : index
      %c0_33 = arith.constant 0 : index
      %49 = vector.load %arg6[%c0_32, %c0_33] : memref<8x1xf32, #tpu.memory_space<vmem>>, vector<8x1xf32>
      tpu.vector_store %arg6[%c0_32, %c0_33], %48 {strides = array<i32>} : memref<8x1xf32, #tpu.memory_space<vmem>>, vector<8x1xf32>,
      %cst_34 = arith.constant 0.000000e+00 : f32
      %50 = vector.broadcast %cst_34 : f32 to vector<8x1xf32>
      %c0_35 = arith.constant 0 : index
      %c0_36 = arith.constant 0 : index
      %51 = vector.load %arg7[%c0_35, %c0_36] : memref<8x1xf32, #tpu.memory_space<vmem>>, vector<8x1xf32>
      tpu.vector_store %arg7[%c0_35, %c0_36], %50 {strides = array<i32>} : memref<8x1xf32, #tpu.memory_space<vmem>>, vector<8x1xf32>,
      %cst_37 = arith.constant 0.000000e+00 : f32
      %52 = vector.broadcast %cst_37 : f32 to vector<8x1xf32>
      %c0_38 = arith.constant 0 : index
      %c0_39 = arith.constant 0 : index
      %53 = vector.load %arg8[%c0_38, %c0_39] : memref<8x1xf32, #tpu.memory_space<vmem>>, vector<8x1xf32>
      tpu.vector_store %arg8[%c0_38, %c0_39], %52 {strides = array<i32>} : memref<8x1xf32, #tpu.memory_space<vmem>>, vector<8x1xf32>,
      %cst_40 = arith.constant 0.000000e+00 : f32
      %54 = vector.broadcast %cst_40 : f32 to vector<8x1xf32>
      %c0_41 = arith.constant 0 : index
      %c0_42 = arith.constant 0 : index
      %55 = vector.load %arg9[%c0_41, %c0_42] : memref<8x1xf32, #tpu.memory_space<vmem>>, vector<8x1xf32>
      tpu.vector_store %arg9[%c0_41, %c0_42], %54 {strides = array<i32>} : memref<8x1xf32, #tpu.memory_space<vmem>>, vector<8x1xf32>,
    } else {
    }
    %c0 = arith.constant 0 : index
    %c0_1 = arith.constant 0 : index
    %3 = vector.load %arg2[%c0, %c0_1] : memref<8x4xf32, #tpu.memory_space<vmem>>, vector<8x4xf32>
    %c0_2 = arith.constant 0 : index
    %c0_3 = arith.constant 0 : index
    %4 = vector.load %arg3[%c0_2, %c0_3] : memref<8x1xi32, #tpu.memory_space<vmem>>, vector<8x1xi32>
    %c0_4 = arith.constant 0 : index
    %c0_5 = arith.constant 0 : index
    %5 = vector.load %arg4[%c0_4, %c0_5] : memref<1x4xf32, #tpu.memory_space<vmem>>, vector<1x4xf32>
    %c4_i32 = arith.constant 4 : i32
    %6 = arith.muli %arg1, %c4_i32 : i32
    %7 = tpu.iota {dimensions = array<i32: 1>} : vector<8x4xi32>
    %8 = vector.broadcast %6 : i32 to vector<8x4xi32>
    %9 = arith.addi %8, %7 : vector<8x4xi32>
    %10 = vector.broadcast %4 : vector<8x1xi32> to vector<8x4xi32>
    %11 = arith.cmpi eq, %9, %10 : vector<8x4xi32>
    %c0_6 = arith.constant 0 : index
    %c0_7 = arith.constant 0 : index
    %12 = vector.load %arg6[%c0_6, %c0_7] : memref<8x1xf32, #tpu.memory_space<vmem>>, vector<8x1xf32>
    %cst = arith.constant dense<0xFF800000> : vector<8xf32>
    %13 = vector.multi_reduction <maximumf>, %3, %cst [1] : vector<8x4xf32> to vector<8xf32>
    %14 = vector.shape_cast %13 : vector<8xf32> to vector<8x1xf32>
    %15 = arith.maximumf %12, %14 : vector<8x1xf32>
    %c0_8 = arith.constant 0 : index
    %c0_9 = arith.constant 0 : index
    %16 = vector.load %arg6[%c0_8, %c0_9] : memref<8x1xf32, #tpu.memory_space<vmem>>, vector<8x1xf32>
    %17 = arith.subf %16, %15 : vector<8x1xf32>
    %18 = math.exp %17 : vector<8x1xf32>
    %c0_10 = arith.constant 0 : index
    %c0_11 = arith.constant 0 : index
    %19 = vector.load %arg7[%c0_10, %c0_11] : memref<8x1xf32, #tpu.memory_space<vmem>>, vector<8x1xf32>
    %20 = arith.mulf %18, %19 : vector<8x1xf32>
    %21 = vector.broadcast %15 : vector<8x1xf32> to vector<8x4xf32>
    %22 = arith.subf %3, %21 : vector<8x4xf32>
    %23 = math.exp %22 : vector<8x4xf32>
    %cst_12 = arith.constant dense<0.000000e+00> : vector<8xf32>
    %24 = vector.multi_reduction <add>, %23, %cst_12 [1] : vector<8x4xf32> to vector<8xf32>
    %25 = vector.shape_cast %24 : vector<8xf32> to vector<8x1xf32>
    %26 = arith.addf %20, %25 : vector<8x1xf32>
    %c0_13 = arith.constant 0 : index
    %c0_14 = arith.constant 0 : index
    %27 = vector.load %arg7[%c0_13, %c0_14] : memref<8x1xf32, #tpu.memory_space<vmem>>, vector<8x1xf32>
    tpu.vector_store %arg7[%c0_13, %c0_14], %26 {strides = array<i32>} : memref<8x1xf32, #tpu.memory_space<vmem>>, vector<8x1xf32>,
    %c0_15 = arith.constant 0 : index
    %c0_16 = arith.constant 0 : index
    %28 = vector.load %arg6[%c0_15, %c0_16] : memref<8x1xf32, #tpu.memory_space<vmem>>, vector<8x1xf32>
    tpu.vector_store %arg6[%c0_15, %c0_16], %15 {strides = array<i32>} : memref<8x1xf32, #tpu.memory_space<vmem>>, vector<8x1xf32>,
    %c0_17 = arith.constant 0 : index
    %c0_18 = arith.constant 0 : index
    %29 = vector.load %arg8[%c0_17, %c0_18] : memref<8x1xf32, #tpu.memory_space<vmem>>, vector<8x1xf32>
    %cst_19 = arith.constant 0.000000e+00 : f32
    %30 = vector.broadcast %cst_19 : f32 to vector<8x4xf32>
    %31 = arith.select %11, %3, %30 : vector<8x4xi1>, vector<8x4xf32>
    %cst_20 = arith.constant dense<0.000000e+00> : vector<8xf32>
    %32 = vector.multi_reduction <add>, %31, %cst_20 [1] : vector<8x4xf32> to vector<8xf32>
    %33 = vector.shape_cast %32 : vector<8xf32> to vector<8x1xf32>
    %34 = arith.addf %29, %33 : vector<8x1xf32>
    %c0_21 = arith.constant 0 : index
    %c0_22 = arith.constant 0 : index
    %35 = vector.load %arg8[%c0_21, %c0_22] : memref<8x1xf32, #tpu.memory_space<vmem>>, vector<8x1xf32>
    tpu.vector_store %arg8[%c0_21, %c0_22], %34 {strides = array<i32>} : memref<8x1xf32, #tpu.memory_space<vmem>>, vector<8x1xf32>,
    %c0_23 = arith.constant 0 : index
    %c0_24 = arith.constant 0 : index
    %36 = vector.load %arg9[%c0_23, %c0_24] : memref<8x1xf32, #tpu.memory_space<vmem>>, vector<8x1xf32>
    %cst_25 = arith.constant 0.000000e+00 : f32
    %37 = vector.shape_cast %5 : vector<1x4xf32> to vector<1x4xf32>
    %38 = vector.broadcast %37 : vector<1x4xf32> to vector<8x4xf32>
    %39 = vector.broadcast %cst_25 : f32 to vector<8x4xf32>
    %40 = arith.select %11, %38, %39 : vector<8x4xi1>, vector<8x4xf32>
    %cst_26 = arith.constant dense<0.000000e+00> : vector<8xf32>
    %41 = vector.multi_reduction <add>, %40, %cst_26 [1] : vector<8x4xf32> to vector<8xf32>
    %42 = vector.shape_cast %41 : vector<8xf32> to vector<8x1xf32>
    %43 = arith.addf %36, %42 : vector<8x1xf32>
    %c0_27 = arith.constant 0 : index
    %c0_28 = arith.constant 0 : index
    %44 = vector.load %arg9[%c0_27, %c0_28] : memref<8x1xf32, #tpu.memory_space<vmem>>, vector<8x1xf32>
    tpu.vector_store %arg9[%c0_27, %c0_28], %43 {strides = array<i32>} : memref<8x1xf32, #tpu.memory_space<vmem>>, vector<8x1xf32>,
    %c0_i32_29 = arith.constant 0 : i32
    %45 = arith.cmpi eq, %arg1, %c0_i32_29 : i32
    %46 = arith.extui %45 : i1 to i32
    %c0_i32_30 = arith.constant 0 : i32
    %47 = arith.cmpi ne, %46, %c0_i32_30 : i32
    scf.if %47 {
      %c0_31 = arith.constant 0 : index
      %c0_32 = arith.constant 0 : index
      %48 = vector.load %arg6[%c0_31, %c0_32] : memref<8x1xf32, #tpu.memory_space<vmem>>, vector<8x1xf32>
      %c0_33 = arith.constant 0 : index
      %c0_34 = arith.constant 0 : index
      %49 = vector.load %arg7[%c0_33, %c0_34] : memref<8x1xf32, #tpu.memory_space<vmem>>, vector<8x1xf32>
      %50 = math.log %49 : vector<8x1xf32>
      %51 = arith.addf %48, %50 : vector<8x1xf32>
      %c0_35 = arith.constant 0 : index
      %c0_36 = arith.constant 0 : index
      %52 = vector.load %arg9[%c0_35, %c0_36] : memref<8x1xf32, #tpu.memory_space<vmem>>, vector<8x1xf32>
      %c0_37 = arith.constant 0 : index
      %c0_38 = arith.constant 0 : index
      %53 = vector.load %arg8[%c0_37, %c0_38] : memref<8x1xf32, #tpu.memory_space<vmem>>, vector<8x1xf32>
      %54 = arith.subf %51, %53 : vector<8x1xf32>
      %55 = arith.mulf %52, %54 : vector<8x1xf32>
      %56 = vector.shape_cast %55 : vector<8x1xf32> to vector<1x8x1xf32>
      %cst_39 = arith.constant dense<0.000000e+00> : vector<1xf32>
      %57 = vector.multi_reduction <add>, %56, %cst_39 [1, 2] : vector<1x8x1xf32> to vector<1xf32>
      %58 = vector.shape_cast %57 : vector<1xf32> to vector<1x1x1xf32>
      %59 = vector.extract %58[0, 0, 0] : f32 from vector<1x1x1xf32>
      %c0_40 = arith.constant 0 : index
      %c0_41 = arith.constant 0 : index
      %60 = vector.load %arg9[%c0_40, %c0_41] : memref<8x1xf32, #tpu.memory_space<vmem>>, vector<8x1xf32>
      %61 = vector.shape_cast %60 : vector<8x1xf32> to vector<1x8x1xf32>
      %cst_42 = arith.constant dense<0.000000e+00> : vector<1xf32>
      %62 = vector.multi_reduction <add>, %61, %cst_42 [1, 2] : vector<1x8x1xf32> to vector<1xf32>
      %63 = vector.shape_cast %62 : vector<1xf32> to vector<1x1x1xf32>
      %64 = vector.extract %63[0, 0, 0] : f32 from vector<1x1x1xf32>
      %65 = tpu.iota {dimensions = array<i32: 0>} : vector<8x128xi32>
      %66 = tpu.iota {dimensions = array<i32: 1>} : vector<8x128xi32>
      %c0_i32_43 = arith.constant 0 : i32
      %67 = vector.broadcast %c0_i32_43 : i32 to vector<8x128xi32>
      %68 = arith.cmpi eq, %65, %67 : vector<8x128xi32>
      %c0_i32_44 = arith.constant 0 : i32
      %69 = vector.broadcast %c0_i32_44 : i32 to vector<8x128xi32>
      %70 = arith.cmpi eq, %66, %69 : vector<8x128xi32>
      %71 = arith.andi %68, %70 : vector<8x128xi1>
      %c0_i32_45 = arith.constant 0 : i32
      %72 = vector.broadcast %c0_i32_45 : i32 to vector<8x128xi32>
      %73 = arith.cmpi eq, %65, %72 : vector<8x128xi32>
      %c1_i32 = arith.constant 1 : i32
      %74 = vector.broadcast %c1_i32 : i32 to vector<8x128xi32>
      %75 = arith.cmpi eq, %66, %74 : vector<8x128xi32>
      %76 = arith.andi %73, %75 : vector<8x128xi1>
      %cst_46 = arith.constant 0.000000e+00 : f32
      %77 = vector.broadcast %64 : f32 to vector<8x128xf32>
      %78 = vector.broadcast %cst_46 : f32 to vector<8x128xf32>
      %79 = arith.select %76, %77, %78 : vector<8x128xi1>, vector<8x128xf32>
      %80 = vector.broadcast %59 : f32 to vector<8x128xf32>
      %81 = arith.select %71, %80, %79 : vector<8x128xi1>, vector<8x128xf32>
      %c0_47 = arith.constant 0 : index
      %c0_48 = arith.constant 0 : index
      %c0_49 = arith.constant 0 : index
      %82 = vector.load %arg5[%c0_47, %c0_48, %c0_49] : memref<1x8x128xf32, #tpu.memory_space<vmem>>, vector<1x8x128xf32>
      %83 = vector.shape_cast %82 : vector<1x8x128xf32> to vector<8x128xf32>
      %84 = vector.shape_cast %81 : vector<8x128xf32> to vector<1x8x128xf32>
      tpu.vector_store %arg5[%c0_47, %c0_48, %c0_49], %84 {strides = array<i32>} : memref<1x8x128xf32, #tpu.memory_space<vmem>>, vector<1x8x128xf32>,
    } else {
    }
    return
  }
  func.func @transform_0(%arg0: i32, %arg1: i32) -> (i32, i32) {
    %c0_i32 = arith.constant 0 : i32
    return %arg0, %arg1 : i32, i32
  }
  func.func @transform_1(%arg0: i32, %arg1: i32) -> (i32, i32) {
    %c0_i32 = arith.constant 0 : i32
    %c0_i32_0 = arith.constant 0 : i32
    return %arg0, %c0_i32 : i32, i32
  }
  func.func @transform_2(%arg0: i32, %arg1: i32) -> (i32, i32) {
    %c0_i32 = arith.constant 0 : i32
    %c0_i32_0 = arith.constant 0 : i32
    return %c0_i32, %arg1 : i32, i32
  }
  func.func @transform_3(%arg0: i32, %arg1: i32) -> (i32, i32, i32) {
    %c0_i32 = arith.constant 0 : i32
    %c0_i32_0 = arith.constant 0 : i32
    %c0_i32_1 = arith.constant 0 : i32
    return %arg0, %c0_i32, %c0_i32_0 : i32, i32, i32
  }
}

</mosaic_0001>

<bundles_post_ra>
// kernel: weighted_cross_entropy.1
= control target key start
LH: loop header
LB: loop body
LE: loop exit
PB: predicated region body
PF: predicated region fallthrough
CT: control target
= control target key end

     0   :  { %vm36_vm0 = vcmask 31744   ;;  %vm18_vm1 = vcmask 7168   ;;  %v145_v1 = vmov -inf   ;;  %v146_v3 = vmov 0   ;;  %s199_s0 = inlined_call_operand.vmem [shape: f32[8,4], index: 0, kind: input, shape index: {}]   ;;  %s200_s1 = inlined_call_operand.vmem [shape: s32[8,1], index: 1, kind: input, shape index: {}]   ;;  %s201_s2 = inlined_call_operand.vmem [shape: f32[1,4], index: 2, kind: input, shape index: {}]   ;;  %s202_s3 = inlined_call_operand.vmem [shape: f32[1,8,128], index: 3, kind: output, shape index: {}]  }
   0x1   :  { %v23_v0 = vld [vmem:[%s199_s0] sm:$0xff]  ;;  %19 = vst.msk [vmem:[#allocation2] sm:$0xff] %vm18_vm1, %v145_v1  ;;  %137 = vset.pattern.permute.xlu0 %v146_v3  ;;  %138 = vset.pattern.permute.xlu1 %v146_v3  ;;  %v147_v5 = vmov 0.0   ;;  %v27_v13 = vlaneseq }
   0x2   :  { %v37_v2 = vsel %vm36_vm0, %v23_v0, -inf  ;;  %v24_v4 = vld [vmem:[%s200_s1] sm:$0xff]  ;;  %20 = vst.msk [vmem:[#allocation3] sm:$0xff] %vm18_vm1, %v147_v5  ;;  %21 = vst.msk [vmem:[#allocation4] sm:$0xff] %vm18_vm1, %v147_v5 }
   0x3   :  { %38 = vmax.xlane.f32.xlu0 %v37_v2  ;;  %32 = vperm.xlu1 %138, %v24_v4   ;;  %22 = vst.msk [vmem:[#allocation5] sm:$0xff] %vm18_vm1, %v147_v5  ;;  %v180_v14 = vand.u32 127, %v27_v13  ;;  %v129_v19 = vld [vmem:[%s201_s2] ss:$0 sm:$0xff]  ;;  %v114_v60 = vshrl.u32 %v27_v13, 7 }
   0x5   :  { %vm115_vm3 = vcmp.eq.s32.totalorder %v114_v60, 0  ;;  %vm118_vm4 = vcmp.eq.s32.totalorder %v180_v14, 1  ;;  %vm116_vm5 = vcmp.eq.s32.totalorder %v180_v14, 0 }
   0x6   :  { %vm119_vm6 = vmand %vm115_vm3, %vm118_vm4 }
   0x7   :  { %vm117_vm7 = vmand %vm115_vm3, %vm116_vm5 }
   0x8   :  { %v35_v6 = vld [vmem:[#allocation2] sm:$0xff] }
   0x9   :  { %v44_v25 = vld [vmem:[#allocation3] sm:$0xff]  ;;  %v61_v29 = vld [vmem:[#allocation4] sm:$0xff] }
   0xa   :  { %v68_v32 = vld [vmem:[#allocation5] sm:$0xff] }
  0x7e   :  { %v33_v15 = vpop.permute.xlu1 %32 }
  0x7f   :  { %vm34_vm2 = vcmp.eq.s32.totalorder %v180_v14, %v33_v15 }
  0x80   :  { %v62_v17 = vsel %vm34_vm2, %v23_v0, 0.0  ;;  %v75_v21 = vsel %vm34_vm2, %v129_v19, 0.0 }
  0x81   :  { %v63_v20 = vsel %vm36_vm0, %v62_v17, 0.0  ;;  %v76_v22 = vsel %vm36_vm0, %v75_v21, 0.0 }
  0x8c   :  { %v39_v7 = vpop.xlane.xlu0 %38 }
  0x8d   :  { %v40_v8 = vmax.f32 %v35_v6, %v39_v7 }
  0x8f   :  { %v41_v9 = vsub.f32 %v35_v6, %v40_v8  ;;  %60 = vst.msk [vmem:[#allocation2] sm:$0xff] %vm18_vm1, %v40_v8  ;;  %48 = vperm.xlu0 %137, %v40_v8  }
  0x91   :  { %v42_v23 = vmul.f32 1.442695, %v41_v9 }
  0x96   :  { %v84_v40 = vld [vmem:[#allocation2] sm:$0xff] }
 0x10a   :  { %v49_v10 = vpop.permute.xlu0 %48 }
 0x10b   :  { %v51_v11 = vsub.f32 %v23_v0, %v49_v10 }
 0x10d   :  { %v52_v12 = vmul.f32 1.442695, %v51_v11 }
 0x10f   :  { %139 = vpow2.f32 %v52_v12 }
 0x110   :  { %141 = vpow2.f32 %v42_v23 }
 0x11c   :  { %v140_v16 = vpop.eup %139 }
 0x11d   :  { %v54_v18 = vsel %vm36_vm0, %v140_v16, 0.0  ;;  %v142_v24 = vpop.eup %141 }
 0x11e   :  { %55 = vadd.xlane.f32.xlu1 %v54_v18  ;;  %v45_v26 = vmul.f32 %v142_v24, %v44_v25 }
 0x122   :  { %64 = vadd.xlane.f32.xlu1 %v63_v20 }
 0x126   :  { %77 = vadd.xlane.f32.xlu1 %v76_v22 }
 0x1a7   :  { %v56_v27 = vpop.xlane.xlu1 %55 }
 0x1a8   :  { %v57_v28 = vadd.f32 %v56_v27, %v45_v26 }
 0x1aa   :  { %59 = vst.msk [vmem:[#allocation3] sm:$0xff] %vm18_vm1, %v57_v28 }
 0x1ab   :  { %v65_v30 = vpop.xlane.xlu1 %64 }
 0x1ac   :  { %v66_v31 = vadd.f32 %v65_v30, %v61_v29 }
 0x1ae   :  { %67 = vst.msk [vmem:[#allocation4] sm:$0xff] %vm18_vm1, %v66_v31 }
 0x1af   :  { %v78_v33 = vpop.xlane.xlu1 %77 }
 0x1b0   :  { %v79_v34 = vadd.f32 %v78_v33, %v68_v32 }
 0x1b1   :  { %v85_v35 = vld [vmem:[#allocation3] sm:$0xff] }
 0x1b2   :  { %80 = vst.msk [vmem:[#allocation5] sm:$0xff] %vm18_vm1, %v79_v34  ;;  %143 = vlog2.f32 %v85_v35 }
 0x1b5   :  { %v90_v42 = vld [vmem:[#allocation4] sm:$0xff] }
 0x1b9   :  { %v89_v36 = vld [vmem:[#allocation5] sm:$0xff] }
 0x1ba   :  { %v103_v37 = vsel %vm18_vm1, %v89_v36, 0.0 }
 0x1bb   :  { %104 = vadd.xlane.f32.xlu1 %v103_v37 }
 0x1bf   :  { %v144_v38 = vpop.eup %143 }
 0x1c0   :  { %v87_v39 = vmul.f32 0.6931472, %v144_v38 }
 0x1c2   :  { %v88_v41 = vadd.f32 %v87_v39, %v84_v40 }
 0x1c4   :  { %v91_v43 = vsub.f32 %v88_v41, %v90_v42 }
 0x1c6   :  { %v92_v44 = vmul.f32 %v91_v43, %v89_v36 }
 0x1c8   :  { %v93_v45 = vsel %vm18_vm1, %v92_v44, 0.0 }
 0x1c9   :  { %94 = vadd.xlane.f32.xlu0 %v93_v45 }
 0x244   :  { %v105_v46 = vpop.xlane.xlu1 %104 }
 0x245   :  { %v106_v47 = vrot.slane %v105_v46, 4 }
 0x247   :  { %v107_v48 = vadd.f32 %v106_v47, %v105_v46 }
 0x249   :  { %v108_v49 = vrot.slane %v107_v48, 2 }
 0x24b   :  { %v109_v53 = vadd.f32 %v108_v49, %v107_v48 }
 0x24d   :  { %v110_v56 = vrot.slane %v109_v53, 1 }
 0x24f   :  { %v111_v59 = vadd.f32 %v110_v56, %v109_v53 }
 0x252   :  { %v95_v50 = vpop.xlane.xlu0 %94 }
 0x253   :  { %v96_v51 = vrot.slane %v95_v50, 4 }
 0x255   :  { %v97_v52 = vadd.f32 %v96_v51, %v95_v50 }
 0x257   :  { %v98_v54 = vrot.slane %v97_v52, 2 }
 0x259   :  { %v99_v55 = vadd.f32 %v98_v54, %v97_v52 }
 0x25b   :  { %v100_v57 = vrot.slane %v99_v55, 1 }
 0x25d   :  { %v101_v58 = vadd.f32 %v100_v57, %v99_v55 }
 0x25f   :  { %130 = vpush %v101_v58 }
 0x260   :  { %132 = vpush %v111_v59 }
 0x290   :  { %s131_s2 = spop %130 }
 0x291   :  { %v122_v61 = vstv %s131_s2  ;;  %s133_s16 = spop %132 }
 0x292   :  { %v120_v62 = vstv %s133_s16 }
 0x293   :  { %v121_v63 = vsel %vm119_vm6, %v120_v62, 0.0 }
 0x294   :  { %v123_v0 = vsel %vm117_vm7, %v122_v61, %v121_v63 }
 0x295   :  { %124 = vst [vmem:[%s202_s3] sm:$0xff] %v123_v0 }

</bundles_post_ra>
